<compile_context>
chip_gen: v6e
topology: v6e:2x2x1
jax: 0.10.0
libtpu: 0.0.40
codegen_flags: <defaults>
</compile_context>

<pallas_src>
import functools

import jax
import jax.numpy as jnp
from jax.experimental import pallas as pl
from jax.experimental.pallas import tpu as pltpu


_LANE = 128   # lane width / padding granularity


def _round_up(v, m):
    return (v + m - 1) // m * m


def _pad2(a, rows, cols):
    return jnp.pad(a, ((0, rows - a.shape[0]), (0, cols - a.shape[1])))


def _pick_tile(dim, preferred):
    """Largest candidate (multiples of 128) that divides `dim`."""
    for t in preferred:
        if dim % t == 0:
            return t
    return _LANE


def _compiler_params(varying_bytes, constant_bytes, semantics):
    # 2x for pipelined (varying-index) blocks, 1x for single-buffered
    # constants, small margin for Mosaic internal scratch.  Clamp to 48 MiB so
    # we never request the entire 64 MiB of a v7x TensorCore.
    # TODO(synk): raise the cap to ~96-112 MiB on 128 MiB-VMEM chips (v5e/v6e)
    # for very large graphs.
    vmem = 2 * varying_bytes + constant_bytes + (2 << 20)
    vmem = int(min(max(vmem, 16 << 20), 48 << 20))
    return pltpu.CompilerParams(dimension_semantics=semantics,
                                vmem_limit_bytes=vmem)


# --------------------------------------------------------------------------
# Kernels
# --------------------------------------------------------------------------
def _proj_kernel(x_ref, w_ref, out_ref):
    """Row tile of XW = X @ W1 (re-associated layer-1 projection)."""
    out_ref[...] = jnp.dot(x_ref[...], w_ref[...],
                           preferred_element_type=jnp.float32
                           ).astype(out_ref.dtype)


def _agg_relu_proj_kernel(adj_ref, feat_ref, b_ref, w_next_ref, out_ref,
                          acc_ref):
    """K-tiled: g1 = relu(A_tile @ XW1 + b1) @ W2  (layer 1 + fused W2)."""
    @pl.when(pl.program_id(1) == 0)
    def _():
        acc_ref[...] = jnp.zeros_like(acc_ref)

    acc_ref[...] += jnp.dot(adj_ref[...], feat_ref[...],
                            preferred_element_type=jnp.float32)

    @pl.when(pl.program_id(1) == pl.num_programs(1) - 1)
    def _():
        # Dropout: identity at inference.
        # TODO(synk): training-mode dropout (pltpu.prng_*) not implemented.
        h = jnp.maximum(acc_ref[...] + b_ref[...], 0.0)
        g = jnp.dot(h.astype(jnp.bfloat16), w_next_ref[...],
                    preferred_element_type=jnp.float32)
        out_ref[...] = g.astype(out_ref.dtype)


def _agg_relu_cls_kernel(num_classes, adj_ref, feat_ref, b_ref, wc_ref,
                         bc_ref, out_ref, acc_ref):
    """K-tiled: layer 2 aggregation + classifier + lane-dense log-softmax."""
    @pl.when(pl.program_id(1) == 0)
    def _():
        acc_ref[...] = jnp.zeros_like(acc_ref)

    acc_ref[...] += jnp.dot(adj_ref[...], feat_ref[...],
                            preferred_element_type=jnp.float32)

    @pl.when(pl.program_id(1) == pl.num_programs(1) - 1)
    def _():
        h = jnp.maximum(acc_ref[...] + b_ref[...], 0.0)          # [TM, Hp]
        logits = jnp.dot(h.astype(jnp.bfloat16), wc_ref[...],
                         preferred_element_type=jnp.float32) + bc_ref[...]
        # logits: [TM, 128]; only the first `num_classes` lanes are real.
        lane = jax.lax.broadcasted_iota(jnp.int32, logits.shape, 1)
        valid = lane < num_classes
        masked = jnp.where(valid, logits, jnp.float32(-1e30))
        m = jnp.max(masked, axis=1, keepdims=True)
        e = jnp.where(valid, jnp.exp(masked - m), 0.0)
        lse = m + jnp.log(jnp.sum(e, axis=1, keepdims=True))
        out_ref[...] = logits - lse   # pad lanes hold garbage, sliced outside


# --------------------------------------------------------------------------
# Host-side wrappers
# --------------------------------------------------------------------------
def prepare_gcn_inputs(adj_norm, x, w1, b1, w2, b2, wc, bc):
    """One-time padding + bf16 casting (hoisted OUT of the per-call path)."""
    n, f_in = x.shape
    h_dim = w1.shape[1]
    c = wc.shape[1]
    assert c <= _LANE, "classifier output must fit in one lane group (<=128)"

    np_ = _round_up(max(n, _LANE), _LANE)
    fp = _round_up(f_in, _LANE)
    hp = _round_up(h_dim, _LANE)
    cp = _LANE

    adj_p = _pad2(jnp.asarray(adj_norm, jnp.float32), np_, np_
                  ).astype(jnp.bfloat16)
    x_p = _pad2(jnp.asarray(x, jnp.float32), np_, fp).astype(jnp.bfloat16)
    w1_p = _pad2(jnp.asarray(w1, jnp.float32), fp, hp).astype(jnp.bfloat16)
    w2_p = _pad2(jnp.asarray(w2, jnp.float32), hp, hp).astype(jnp.bfloat16)
    wc_p = _pad2(jnp.asarray(wc, jnp.float32), hp, cp).astype(jnp.bfloat16)
    b1_p = _pad2(jnp.asarray(b1, jnp.float32), 1, hp)
    b2_p = _pad2(jnp.asarray(b2, jnp.float32), 1, hp)
    bc_p = _pad2(jnp.asarray(bc, jnp.float32), 1, cp)
    return adj_p, x_p, w1_p, b1_p, w2_p, b2_p, wc_p, bc_p


def gcn_anomaly_forward(adj_p, x_p, w1_p, b1_p, w2_p, b2_p, wc_p, bc_p,
                        *, num_nodes, num_classes):
    """Fused GCN forward on pre-padded bf16 inputs.  Returns [N, C] f32."""
    np_ = adj_p.shape[0]
    fp = x_p.shape[1]
    hp = w1_p.shape[1]
    cp = wc_p.shape[1]

    tm = _pick_tile(np_, (256, 128))            # 256 feeds the 256-wide MXU
    tk = _pick_tile(np_, (512, 256, 128))       # contraction (Np) tile
    rows = np_ // tm
    ks = np_ // tk

    # ---- projection: XW1 = X @ W1 (tiny vs. the N^2 aggregation) ----------
    xw1 = pl.pallas_call(
        _proj_kernel,
        out_shape=jax.ShapeDtypeStruct((np_, hp), jnp.bfloat16),
        grid=(rows,),
        in_specs=[
            pl.BlockSpec((tm, fp), lambda i: (i, 0)),
            pl.BlockSpec((fp, hp), lambda i: (0, 0),
                         pipeline_mode=pl.Buffered(1)),
        ],
        out_specs=pl.BlockSpec((tm, hp), lambda i: (i, 0)),
        compiler_params=_compiler_params(
            varying_bytes=(tm * fp + tm * hp) * 2,
            constant_bytes=fp * hp * 2,
            semantics=("parallel",)),
        cost_estimate=pl.CostEstimate(
            flops=2 * np_ * fp * hp, transcendentals=0,
            bytes_accessed=np_ * fp * 2 + fp * hp * 2 + np_ * hp * 2),
    )(x_p, w1_p)

    # ---- layer 1: g1 = relu(A_hat @ XW1 + b1) @ W2 (K-tiled, acc scratch) --
    g1 = pl.pallas_call(
        _agg_relu_proj_kernel,
        out_shape=jax.ShapeDtypeStruct((np_, hp), jnp.bfloat16),
        grid=(rows, ks),
        in_specs=[
            pl.BlockSpec((tm, tk), lambda i, k: (i, k)),       # adjacency
            pl.BlockSpec((tk, hp), lambda i, k: (k, 0)),       # XW1 k-tile
            pl.BlockSpec((1, hp), lambda i, k: (0, 0),
                         pipeline_mode=pl.Buffered(1)),        # b1
            pl.BlockSpec((hp, hp), lambda i, k: (0, 0),
                         pipeline_mode=pl.Buffered(1)),        # W2 (fused)
        ],
        out_specs=pl.BlockSpec((tm, hp), lambda i, k: (i, 0)),
        scratch_shapes=[pltpu.VMEM((tm, hp), jnp.float32)],
        compiler_params=_compiler_params(
            varying_bytes=(tm * tk + tk * hp + tm * hp) * 2,
            constant_bytes=hp * 4 + hp * hp * 2 + tm * hp * 4,
            semantics=("parallel", "arbitrary")),
        cost_estimate=pl.CostEstimate(
            flops=2 * np_ * np_ * hp + 2 * np_ * hp * hp,
            transcendentals=0,
            bytes_accessed=np_ * np_ * 2 + np_ * hp * 2 + hp * 4
            + hp * hp * 2 + np_ * hp * 2),
    )(adj_p, xw1, b1_p, w2_p)

    # ---- layer 2 + classifier + lane-dense log-softmax (K-tiled) ----------
    out_p = pl.pallas_call(
        functools.partial(_agg_relu_cls_kernel, num_classes),
        out_shape=jax.ShapeDtypeStruct((np_, cp), jnp.float32),
        grid=(rows, ks),
        in_specs=[
            pl.BlockSpec((tm, tk), lambda i, k: (i, k)),       # adjacency
            pl.BlockSpec((tk, hp), lambda i, k: (k, 0)),       # g1 k-tile
            pl.BlockSpec((1, hp), lambda i, k: (0, 0),
                         pipeline_mode=pl.Buffered(1)),        # b2
            pl.BlockSpec((hp, cp), lambda i, k: (0, 0),
                         pipeline_mode=pl.Buffered(1)),        # Wc (padded)
            pl.BlockSpec((1, cp), lambda i, k: (0, 0),
                         pipeline_mode=pl.Buffered(1)),        # bc (padded)
        ],
        out_specs=pl.BlockSpec((tm, cp), lambda i, k: (i, 0)),
        scratch_shapes=[pltpu.VMEM((tm, hp), jnp.float32)],
        compiler_params=_compiler_params(
            varying_bytes=(tm * tk + tk * hp) * 2 + tm * cp * 4,
            constant_bytes=(hp + cp) * 4 + hp * cp * 2 + tm * hp * 4,
            semantics=("parallel", "arbitrary")),
        cost_estimate=pl.CostEstimate(
            flops=2 * np_ * np_ * hp + 2 * np_ * hp * cp,
            transcendentals=np_ * cp,
            bytes_accessed=np_ * np_ * 2 + np_ * hp * 2 + (hp + cp) * 4
            + hp * cp * 2 + np_ * cp * 4),
    )(adj_p, g1, b2_p, wc_p, bc_p)

    return out_p[:num_nodes, :num_classes]


def build_normalized_adjacency(edge_index, num_nodes):
    """Dense D^{-1/2}(A + remaining self loops)D^{-1/2} from [2, E] edges."""
    src, dst = edge_index[0], edge_index[1]
    a = jnp.zeros((num_nodes, num_nodes), jnp.float32)
    # Scatter-ADD so duplicate edges sum (matches PyG message passing).
    a = a.at[dst, src].add(1.0)
    # add_remaining_self_loops: only add a self loop where none exists.
    diag = jnp.diagonal(a)
    a = a + jnp.diag(jnp.where(diag == 0.0, 1.0, 0.0))
    deg = jnp.sum(a, axis=1)
    d_inv_sqrt = jnp.where(deg > 0, 1.0 / jnp.sqrt(deg), 0.0)
    return d_inv_sqrt[:, None] * a * d_inv_sqrt[None, :]


def init_params(key, input_dim, hidden_dim, output_dim):
    """Deterministic synthetic parameters (Glorot-ish uniform)."""
    ks = jax.random.split(key, 4)

    def glorot(k, shape):
        lim = jnp.sqrt(6.0 / (shape[0] + shape[1]))
        return jax.random.uniform(k, shape, jnp.float32, -lim, lim)

    w1 = glorot(ks[0], (input_dim, hidden_dim))
    b1 = jnp.zeros((1, hidden_dim), jnp.float32)
    w2 = glorot(ks[1], (hidden_dim, hidden_dim))
    b2 = jnp.zeros((1, hidden_dim), jnp.float32)
    wc = glorot(ks[2], (hidden_dim, output_dim))
    bc = 0.01 * jax.random.normal(ks[3], (1, output_dim), jnp.float32)
    return w1, b1, w2, b2, wc, bc


if __name__ == "__main__":
    key = jax.random.PRNGKey(0)

    num_nodes = 16
    input_dim = 16
    hidden_dim = 64        # module default
    output_dim = 2
    num_edges = 24

    k_feat, k_edge, k_param = jax.random.split(key, 3)

    # Node features [N, F_in]
    x = jax.random.normal(k_feat, (num_nodes, input_dim), jnp.float32)

    # Random undirected edge_index [2, 2E]
    src = jax.random.randint(k_edge, (num_edges,), 0, num_nodes)
    dst = jax.random.randint(jax.random.fold_in(k_edge, 1),
                             (num_edges,), 0, num_nodes)
    edge_index = jnp.stack(
        [jnp.concatenate([src, dst]), jnp.concatenate([dst, src])], axis=0)

    adj_norm = build_normalized_adjacency(edge_index, num_nodes)
    w1, b1, w2, b2, wc, bc = init_params(k_param, input_dim, hidden_dim,
                                         output_dim)

    # One-time graph/parameter preparation (padding + bf16 cast) -- kept
    # OUTSIDE the per-call jitted forward path.
    padded = prepare_gcn_inputs(adj_norm, x, w1, b1, w2, b2, wc, bc)

    fwd = jax.jit(functools.partial(gcn_anomaly_forward,
                                    num_nodes=num_nodes,
                                    num_classes=output_dim))
    log_probs = fwd(*padded)
    jax.block_until_ready(log_probs)

    # Sanity checks: shape, rows sum to 1 in prob space, matches f32 reference.
    assert log_probs.shape == (num_nodes, output_dim)
    row_sums = jnp.sum(jnp.exp(log_probs), axis=1)
    assert bool(jnp.all(jnp.abs(row_sums - 1.0) < 1e-4))

    def reference(adj, x, w1, b1, w2, b2, wc, bc):
        h = jax.nn.relu(adj @ (x @ w1) + b1)
        h = jax.nn.relu(adj @ (h @ w2) + b2)
        return jax.nn.log_softmax(h @ wc + bc, axis=1)

    ref = reference(adj_norm, x, w1, b1, w2, b2, wc, bc)
    max_err = float(jnp.max(jnp.abs(log_probs - ref)))
    assert max_err < 0.3, f"max |diff| vs f32 reference = {max_err}"

    print("KERNEL_OK")
</pallas_src>

<mosaic_0001>
module attributes {stable_mosaic.version = 11 : i64} {
  func.func @_agg_relu_cls_kernel(%arg0: i32, %arg1: i32, %arg2: memref<128x128xbf16, #tpu.memory_space<vmem>>, %arg3: memref<128x128xbf16, #tpu.memory_space<vmem>>, %arg4: memref<1x128xf32, #tpu.memory_space<vmem>>, %arg5: memref<128x128xbf16, #tpu.memory_space<vmem>>, %arg6: memref<1x128xf32, #tpu.memory_space<vmem>>, %arg7: memref<128x128xf32, #tpu.memory_space<vmem>>, %arg8: memref<128x128xf32, #tpu.memory_space<vmem>>) attributes {dimension_semantics = [#tpu.dimension_semantics<parallel>, #tpu.dimension_semantics<arbitrary>], iteration_bounds = array<i64: 1, 1>, scalar_prefetch = 0 : i64, scratch_operands = 1 : i64, tpu.core_type = #tpu.core_type<tc>, window_params = [{transform_indices = @transform_0, window_bounds = array<i64: 128, 128>}, {transform_indices = @transform_1, window_bounds = array<i64: 128, 128>}, {pipeline_mode = #tpu.pipeline_mode<synchronous>, transform_indices = @transform_2, window_bounds = array<i64: 1, 128>}, {pipeline_mode = #tpu.pipeline_mode<synchronous>, transform_indices = @transform_3, window_bounds = array<i64: 128, 128>}, {pipeline_mode = #tpu.pipeline_mode<synchronous>, transform_indices = @transform_4, window_bounds = array<i64: 1, 128>}, {transform_indices = @transform_5, window_bounds = array<i64: 128, 128>}]} {
    %c0_i32 = arith.constant 0 : i32
    %0 = arith.cmpi eq, %arg1, %c0_i32 : i32
    %1 = arith.extui %0 : i1 to i32
    %c0_i32_0 = arith.constant 0 : i32
    %2 = arith.cmpi ne, %1, %c0_i32_0 : i32
    scf.if %2 {
      %cst_10 = arith.constant 0.000000e+00 : f32
      %12 = vector.broadcast %cst_10 : f32 to vector<128x128xf32>
      %c0_11 = arith.constant 0 : index
      %c0_12 = arith.constant 0 : index
      %13 = vector.load %arg8[%c0_11, %c0_12] : memref<128x128xf32, #tpu.memory_space<vmem>>, vector<128x128xf32>
      tpu.vector_store %arg8[%c0_11, %c0_12], %12 {strides = array<i32>} : memref<128x128xf32, #tpu.memory_space<vmem>>, vector<128x128xf32>,
    } else {
    }
    %c0 = arith.constant 0 : index
    %c0_1 = arith.constant 0 : index
    %3 = vector.load %arg8[%c0, %c0_1] : memref<128x128xf32, #tpu.memory_space<vmem>>, vector<128x128xf32>
    %c0_2 = arith.constant 0 : index
    %c0_3 = arith.constant 0 : index
    %4 = vector.load %arg2[%c0_2, %c0_3] : memref<128x128xbf16, #tpu.memory_space<vmem>>, vector<128x128xbf16>
    %c0_4 = arith.constant 0 : index
    %c0_5 = arith.constant 0 : index
    %5 = vector.load %arg3[%c0_4, %c0_5] : memref<128x128xbf16, #tpu.memory_space<vmem>>, vector<128x128xbf16>
    %cst = arith.constant dense<0.000000e+00> : vector<128x128xf32>
    %6 = tpu.matmul %4, %5, %cst {dimension_numbers = #tpu.dot_dimension_numbers<[1], [0], [0], [1], [0, 0, 1, 1], [], []>} : vector<128x128xbf16>, vector<128x128xbf16>, vector<128x128xf32> -> vector<128x128xf32>
    %7 = arith.addf %3, %6 : vector<128x128xf32>
    %c0_6 = arith.constant 0 : index
    %c0_7 = arith.constant 0 : index
    %8 = vector.load %arg8[%c0_6, %c0_7] : memref<128x128xf32, #tpu.memory_space<vmem>>, vector<128x128xf32>
    tpu.vector_store %arg8[%c0_6, %c0_7], %7 {strides = array<i32>} : memref<128x128xf32, #tpu.memory_space<vmem>>, vector<128x128xf32>,
    %c0_i32_8 = arith.constant 0 : i32
    %9 = arith.cmpi eq, %arg1, %c0_i32_8 : i32
    %10 = arith.extui %9 : i1 to i32
    %c0_i32_9 = arith.constant 0 : i32
    %11 = arith.cmpi ne, %10, %c0_i32_9 : i32
    scf.if %11 {
      %c0_10 = arith.constant 0 : index
      %c0_11 = arith.constant 0 : index
      %12 = vector.load %arg8[%c0_10, %c0_11] : memref<128x128xf32, #tpu.memory_space<vmem>>, vector<128x128xf32>
      %c0_12 = arith.constant 0 : index
      %c0_13 = arith.constant 0 : index
      %13 = vector.load %arg4[%c0_12, %c0_13] : memref<1x128xf32, #tpu.memory_space<vmem>>, vector<1x128xf32>
      %14 = vector.broadcast %13 : vector<1x128xf32> to vector<128x128xf32>
      %15 = arith.addf %12, %14 : vector<128x128xf32>
      %cst_14 = arith.constant 0.000000e+00 : f32
      %16 = vector.broadcast %cst_14 : f32 to vector<128x128xf32>
      %17 = arith.maximumf %15, %16 : vector<128x128xf32>
      %18 = arith.truncf %17 : vector<128x128xf32> to vector<128x128xbf16>
      %c0_15 = arith.constant 0 : index
      %c0_16 = arith.constant 0 : index
      %19 = vector.load %arg5[%c0_15, %c0_16] : memref<128x128xbf16, #tpu.memory_space<vmem>>, vector<128x128xbf16>
      %cst_17 = arith.constant dense<0.000000e+00> : vector<128x128xf32>
      %20 = tpu.matmul %18, %19, %cst_17 {dimension_numbers = #tpu.dot_dimension_numbers<[1], [0], [0], [1], [0, 0, 1, 1], [], []>} : vector<128x128xbf16>, vector<128x128xbf16>, vector<128x128xf32> -> vector<128x128xf32>
      %c0_18 = arith.constant 0 : index
      %c0_19 = arith.constant 0 : index
      %21 = vector.load %arg6[%c0_18, %c0_19] : memref<1x128xf32, #tpu.memory_space<vmem>>, vector<1x128xf32>
      %22 = vector.broadcast %21 : vector<1x128xf32> to vector<128x128xf32>
      %23 = arith.addf %20, %22 : vector<128x128xf32>
      %24 = tpu.iota {dimensions = array<i32: 1>} : vector<128x128xi32>
      %c2_i32 = arith.constant 2 : i32
      %25 = vector.broadcast %c2_i32 : i32 to vector<128x128xi32>
      %26 = arith.cmpi slt, %24, %25 : vector<128x128xi32>
      %cst_20 = arith.constant -1.000000e+30 : f32
      %27 = vector.broadcast %cst_20 : f32 to vector<128x128xf32>
      %28 = arith.select %26, %23, %27 : vector<128x128xi1>, vector<128x128xf32>
      %cst_21 = arith.constant dense<0xFF800000> : vector<128xf32>
      %29 = vector.multi_reduction <maximumf>, %28, %cst_21 [1] : vector<128x128xf32> to vector<128xf32>
      %30 = vector.shape_cast %29 : vector<128xf32> to vector<128x1xf32>
      %31 = vector.broadcast %30 : vector<128x1xf32> to vector<128x128xf32>
      %32 = arith.subf %28, %31 : vector<128x128xf32>
      %33 = math.exp %32 : vector<128x128xf32>
      %cst_22 = arith.constant 0.000000e+00 : f32
      %34 = vector.broadcast %cst_22 : f32 to vector<128x128xf32>
      %35 = arith.select %26, %33, %34 : vector<128x128xi1>, vector<128x128xf32>
      %cst_23 = arith.constant dense<0.000000e+00> : vector<128xf32>
      %36 = vector.multi_reduction <add>, %35, %cst_23 [1] : vector<128x128xf32> to vector<128xf32>
      %37 = vector.shape_cast %36 : vector<128xf32> to vector<128x1xf32>
      %38 = math.log %37 : vector<128x1xf32>
      %39 = arith.addf %30, %38 : vector<128x1xf32>
      %40 = vector.broadcast %39 : vector<128x1xf32> to vector<128x128xf32>
      %41 = arith.subf %23, %40 : vector<128x128xf32>
      %c0_24 = arith.constant 0 : index
      %c0_25 = arith.constant 0 : index
      %42 = vector.load %arg7[%c0_24, %c0_25] : memref<128x128xf32, #tpu.memory_space<vmem>>, vector<128x128xf32>
      tpu.vector_store %arg7[%c0_24, %c0_25], %41 {strides = array<i32>} : memref<128x128xf32, #tpu.memory_space<vmem>>, vector<128x128xf32>,
    } else {
    }
    return
  }
  func.func @transform_0(%arg0: i32, %arg1: i32) -> (i32, i32) {
    %c0_i32 = arith.constant 0 : i32
    return %arg0, %arg1 : i32, i32
  }
  func.func @transform_1(%arg0: i32, %arg1: i32) -> (i32, i32) {
    %c0_i32 = arith.constant 0 : i32
    %c0_i32_0 = arith.constant 0 : i32
    return %arg1, %c0_i32 : i32, i32
  }
  func.func @transform_2(%arg0: i32, %arg1: i32) -> (i32, i32) {
    %c0_i32 = arith.constant 0 : i32
    %c0_i32_0 = arith.constant 0 : i32
    %c0_i32_1 = arith.constant 0 : i32
    return %c0_i32, %c0_i32_0 : i32, i32
  }
  func.func @transform_3(%arg0: i32, %arg1: i32) -> (i32, i32) {
    %c0_i32 = arith.constant 0 : i32
    %c0_i32_0 = arith.constant 0 : i32
    %c0_i32_1 = arith.constant 0 : i32
    return %c0_i32, %c0_i32_0 : i32, i32
  }
  func.func @transform_4(%arg0: i32, %arg1: i32) -> (i32, i32) {
    %c0_i32 = arith.constant 0 : i32
    %c0_i32_0 = arith.constant 0 : i32
    %c0_i32_1 = arith.constant 0 : i32
    return %c0_i32, %c0_i32_0 : i32, i32
  }
  func.func @transform_5(%arg0: i32, %arg1: i32) -> (i32, i32) {
    %c0_i32 = arith.constant 0 : i32
    %c0_i32_0 = arith.constant 0 : i32
    return %arg0, %c0_i32 : i32, i32
  }
}

module attributes {stable_mosaic.version = 11 : i64} {
  func.func @_proj_kernel(%arg0: i32, %arg1: memref<128x128xbf16, #tpu.memory_space<vmem>>, %arg2: memref<128x128xbf16, #tpu.memory_space<vmem>>, %arg3: memref<128x128xbf16, #tpu.memory_space<vmem>>) attributes {dimension_semantics = [#tpu.dimension_semantics<parallel>], iteration_bounds = array<i64: 1>, scalar_prefetch = 0 : i64, scratch_operands = 0 : i64, tpu.core_type = #tpu.core_type<tc>, window_params = [{transform_indices = @transform_0, window_bounds = array<i64: 128, 128>}, {pipeline_mode = #tpu.pipeline_mode<synchronous>, transform_indices = @transform_1, window_bounds = array<i64: 128, 128>}, {transform_indices = @transform_2, window_bounds = array<i64: 128, 128>}]} {
    %c0 = arith.constant 0 : index
    %c0_0 = arith.constant 0 : index
    %0 = vector.load %arg1[%c0, %c0_0] : memref<128x128xbf16, #tpu.memory_space<vmem>>, vector<128x128xbf16>
    %c0_1 = arith.constant 0 : index
    %c0_2 = arith.constant 0 : index
    %1 = vector.load %arg2[%c0_1, %c0_2] : memref<128x128xbf16, #tpu.memory_space<vmem>>, vector<128x128xbf16>
    %cst = arith.constant dense<0.000000e+00> : vector<128x128xf32>
    %2 = tpu.matmul %0, %1, %cst {dimension_numbers = #tpu.dot_dimension_numbers<[1], [0], [0], [1], [0, 0, 1, 1], [], []>} : vector<128x128xbf16>, vector<128x128xbf16>, vector<128x128xf32> -> vector<128x128xf32>
    %3 = arith.truncf %2 : vector<128x128xf32> to vector<128x128xbf16>
    %c0_3 = arith.constant 0 : index
    %c0_4 = arith.constant 0 : index
    %4 = vector.load %arg3[%c0_3, %c0_4] : memref<128x128xbf16, #tpu.memory_space<vmem>>, vector<128x128xbf16>
    tpu.vector_store %arg3[%c0_3, %c0_4], %3 {strides = array<i32>} : memref<128x128xbf16, #tpu.memory_space<vmem>>, vector<128x128xbf16>,
    return
  }
  func.func @transform_0(%arg0: i32) -> (i32, i32) {
    %c0_i32 = arith.constant 0 : i32
    %c0_i32_0 = arith.constant 0 : i32
    return %arg0, %c0_i32 : i32, i32
  }
  func.func @transform_1(%arg0: i32) -> (i32, i32) {
    %c0_i32 = arith.constant 0 : i32
    %c0_i32_0 = arith.constant 0 : i32
    %c0_i32_1 = arith.constant 0 : i32
    return %c0_i32, %c0_i32_0 : i32, i32
  }
  func.func @transform_2(%arg0: i32) -> (i32, i32) {
    %c0_i32 = arith.constant 0 : i32
    %c0_i32_0 = arith.constant 0 : i32
    return %arg0, %c0_i32 : i32, i32
  }
}

module attributes {stable_mosaic.version = 11 : i64} {
  func.func @_agg_relu_proj_kernel(%arg0: i32, %arg1: i32, %arg2: memref<128x128xbf16, #tpu.memory_space<vmem>>, %arg3: memref<128x128xbf16, #tpu.memory_space<vmem>>, %arg4: memref<1x128xf32, #tpu.memory_space<vmem>>, %arg5: memref<128x128xbf16, #tpu.memory_space<vmem>>, %arg6: memref<128x128xbf16, #tpu.memory_space<vmem>>, %arg7: memref<128x128xf32, #tpu.memory_space<vmem>>) attributes {dimension_semantics = [#tpu.dimension_semantics<parallel>, #tpu.dimension_semantics<arbitrary>], iteration_bounds = array<i64: 1, 1>, scalar_prefetch = 0 : i64, scratch_operands = 1 : i64, tpu.core_type = #tpu.core_type<tc>, window_params = [{transform_indices = @transform_0, window_bounds = array<i64: 128, 128>}, {transform_indices = @transform_1, window_bounds = array<i64: 128, 128>}, {pipeline_mode = #tpu.pipeline_mode<synchronous>, transform_indices = @transform_2, window_bounds = array<i64: 1, 128>}, {pipeline_mode = #tpu.pipeline_mode<synchronous>, transform_indices = @transform_3, window_bounds = array<i64: 128, 128>}, {transform_indices = @transform_4, window_bounds = array<i64: 128, 128>}]} {
    %c0_i32 = arith.constant 0 : i32
    %0 = arith.cmpi eq, %arg1, %c0_i32 : i32
    %1 = arith.extui %0 : i1 to i32
    %c0_i32_0 = arith.constant 0 : i32
    %2 = arith.cmpi ne, %1, %c0_i32_0 : i32
    scf.if %2 {
      %cst_10 = arith.constant 0.000000e+00 : f32
      %12 = vector.broadcast %cst_10 : f32 to vector<128x128xf32>
      %c0_11 = arith.constant 0 : index
      %c0_12 = arith.constant 0 : index
      %13 = vector.load %arg7[%c0_11, %c0_12] : memref<128x128xf32, #tpu.memory_space<vmem>>, vector<128x128xf32>
      tpu.vector_store %arg7[%c0_11, %c0_12], %12 {strides = array<i32>} : memref<128x128xf32, #tpu.memory_space<vmem>>, vector<128x128xf32>,
    } else {
    }
    %c0 = arith.constant 0 : index
    %c0_1 = arith.constant 0 : index
    %3 = vector.load %arg7[%c0, %c0_1] : memref<128x128xf32, #tpu.memory_space<vmem>>, vector<128x128xf32>
    %c0_2 = arith.constant 0 : index
    %c0_3 = arith.constant 0 : index
    %4 = vector.load %arg2[%c0_2, %c0_3] : memref<128x128xbf16, #tpu.memory_space<vmem>>, vector<128x128xbf16>
    %c0_4 = arith.constant 0 : index
    %c0_5 = arith.constant 0 : index
    %5 = vector.load %arg3[%c0_4, %c0_5] : memref<128x128xbf16, #tpu.memory_space<vmem>>, vector<128x128xbf16>
    %cst = arith.constant dense<0.000000e+00> : vector<128x128xf32>
    %6 = tpu.matmul %4, %5, %cst {dimension_numbers = #tpu.dot_dimension_numbers<[1], [0], [0], [1], [0, 0, 1, 1], [], []>} : vector<128x128xbf16>, vector<128x128xbf16>, vector<128x128xf32> -> vector<128x128xf32>
    %7 = arith.addf %3, %6 : vector<128x128xf32>
    %c0_6 = arith.constant 0 : index
    %c0_7 = arith.constant 0 : index
    %8 = vector.load %arg7[%c0_6, %c0_7] : memref<128x128xf32, #tpu.memory_space<vmem>>, vector<128x128xf32>
    tpu.vector_store %arg7[%c0_6, %c0_7], %7 {strides = array<i32>} : memref<128x128xf32, #tpu.memory_space<vmem>>, vector<128x128xf32>,
    %c0_i32_8 = arith.constant 0 : i32
    %9 = arith.cmpi eq, %arg1, %c0_i32_8 : i32
    %10 = arith.extui %9 : i1 to i32
    %c0_i32_9 = arith.constant 0 : i32
    %11 = arith.cmpi ne, %10, %c0_i32_9 : i32
    scf.if %11 {
      %c0_10 = arith.constant 0 : index
      %c0_11 = arith.constant 0 : index
      %12 = vector.load %arg7[%c0_10, %c0_11] : memref<128x128xf32, #tpu.memory_space<vmem>>, vector<128x128xf32>
      %c0_12 = arith.constant 0 : index
      %c0_13 = arith.constant 0 : index
      %13 = vector.load %arg4[%c0_12, %c0_13] : memref<1x128xf32, #tpu.memory_space<vmem>>, vector<1x128xf32>
      %14 = vector.broadcast %13 : vector<1x128xf32> to vector<128x128xf32>
      %15 = arith.addf %12, %14 : vector<128x128xf32>
      %cst_14 = arith.constant 0.000000e+00 : f32
      %16 = vector.broadcast %cst_14 : f32 to vector<128x128xf32>
      %17 = arith.maximumf %15, %16 : vector<128x128xf32>
      %18 = arith.truncf %17 : vector<128x128xf32> to vector<128x128xbf16>
      %c0_15 = arith.constant 0 : index
      %c0_16 = arith.constant 0 : index
      %19 = vector.load %arg5[%c0_15, %c0_16] : memref<128x128xbf16, #tpu.memory_space<vmem>>, vector<128x128xbf16>
      %cst_17 = arith.constant dense<0.000000e+00> : vector<128x128xf32>
      %20 = tpu.matmul %18, %19, %cst_17 {dimension_numbers = #tpu.dot_dimension_numbers<[1], [0], [0], [1], [0, 0, 1, 1], [], []>} : vector<128x128xbf16>, vector<128x128xbf16>, vector<128x128xf32> -> vector<128x128xf32>
      %21 = arith.truncf %20 : vector<128x128xf32> to vector<128x128xbf16>
      %c0_18 = arith.constant 0 : index
      %c0_19 = arith.constant 0 : index
      %22 = vector.load %arg6[%c0_18, %c0_19] : memref<128x128xbf16, #tpu.memory_space<vmem>>, vector<128x128xbf16>
      tpu.vector_store %arg6[%c0_18, %c0_19], %21 {strides = array<i32>} : memref<128x128xbf16, #tpu.memory_space<vmem>>, vector<128x128xbf16>,
    } else {
    }
    return
  }
  func.func @transform_0(%arg0: i32, %arg1: i32) -> (i32, i32) {
    %c0_i32 = arith.constant 0 : i32
    return %arg0, %arg1 : i32, i32
  }
  func.func @transform_1(%arg0: i32, %arg1: i32) -> (i32, i32) {
    %c0_i32 = arith.constant 0 : i32
    %c0_i32_0 = arith.constant 0 : i32
    return %arg1, %c0_i32 : i32, i32
  }
  func.func @transform_2(%arg0: i32, %arg1: i32) -> (i32, i32) {
    %c0_i32 = arith.constant 0 : i32
    %c0_i32_0 = arith.constant 0 : i32
    %c0_i32_1 = arith.constant 0 : i32
    return %c0_i32, %c0_i32_0 : i32, i32
  }
  func.func @transform_3(%arg0: i32, %arg1: i32) -> (i32, i32) {
    %c0_i32 = arith.constant 0 : i32
    %c0_i32_0 = arith.constant 0 : i32
    %c0_i32_1 = arith.constant 0 : i32
    return %c0_i32, %c0_i32_0 : i32, i32
  }
  func.func @transform_4(%arg0: i32, %arg1: i32) -> (i32, i32) {
    %c0_i32 = arith.constant 0 : i32
    %c0_i32_0 = arith.constant 0 : i32
    return %arg0, %c0_i32 : i32, i32
  }
}

</mosaic_0001>

<bundles_post_ra>
// kernel: gcn_anomaly_forward.3
= control target key start
LH: loop header
LB: loop body
LE: loop exit
PB: predicated region body
PF: predicated region fallthrough
CT: control target
= control target key end

     0   :  { %7 = vsyncpa [#allocation3], 0  ;;  %s623_s0 = inlined_call_operand.hbm [shape: bf16[128,128], index: 0, kind: input, shape index: {}]   ;;  %s624_s1 = inlined_call_operand.hbm [shape: bf16[128,128], index: 1, kind: input, shape index: {}]   ;;  %s625_s2 = inlined_call_operand.vmem [shape: bf16[128,128], index: 2, kind: output, shape index: {}]  }
   0x1   :  { %8 = vsyncpa [#allocation5], 0  ;;  %s574_s9 = smov [#allocation2]  }
   0x2   :  { %s14_s10 = sshll.u32 %s574_s9, 4  ;;  %s15_s10 = int_to_ptr.vmem [resolvable:$true] %s14_s10 }
   0x3   :  { %s538_s11 = scalar_lea.vmem %s15_s10, 1024  ;;  %p543_p1 = scmp.lt.s32.totalorder %s15_s10, %s15_s10 }
   0x4   :  { %p539_p0 = scmp.ne.s32.totalorder %s15_s10, %s538_s11  ;;  %p544_p2 = scmp.lt.s32.totalorder %s538_s11, %s538_s11 }
   0x6   :  { %p545_p3 = por %p544_p2, %p543_p1 }
   0x8   :  { %p546_p4 = pnand %p545_p3, %p539_p0 }
   0xa   :  { %549 = shalt.err (!%p546_p4)
}
   0xb   :  { %s575_s12 = smov 64   ;;  %s576_s13 = smov 4  }
   0xc   :  { %20 = dma.hbm_to_vmem [thread:$0]  %s623_s0, 1024, %s15_s10, [#allocation3], %s575_s12, %s575_s12, %s576_s13  }
   0xd   :  { %s577_s16 = smov [#allocation4]  }
   0xe   :  { %s26_s17 = sshll.u32 %s577_s16, 4  ;;  %s27_s17 = int_to_ptr.vmem [resolvable:$true] %s26_s17 }
   0xf   :  { %s558_s18 = scalar_lea.vmem %s27_s17, 1024  ;;  %p563_p6 = scmp.lt.s32.totalorder %s27_s17, %s27_s17 }
  0x10   :  { %p559_p5 = scmp.ne.s32.totalorder %s27_s17, %s558_s18  ;;  %p564_p7 = scmp.lt.s32.totalorder %s558_s18, %s558_s18 }
  0x12   :  { %p565_p8 = por %p564_p7, %p563_p6 }
  0x14   :  { %p566_p9 = pnand %p565_p8, %p559_p5 }
  0x16   :  { %569 = shalt.err (!%p566_p9)
}
  0x17   :  { %32 = dma.hbm_to_vmem [thread:$0]  %s624_s1, 1024, %s27_s17, [#allocation5], %s575_s12, %s575_s12, %s576_s13  }
  0x18   :  { %570 = dma.done.wait [#allocation3], 1024  }
  0x19   :  { %571 = vsyncadd [#allocation3], 4294966272 }
  0x1a   :  { %572 = dma.done.wait [#allocation5], 1024  }
  0x1b   :  { %573 = vsyncadd [#allocation5], 4294966272  ;;  %v514_v0 = vld [vmem:[#allocation4 + $0x38] sm:$0xff]   ;;  %v515_v1 = vld [vmem:[#allocation4 + $0x30] sm:$0xff]  }
  0x1c   :  { %462 = vmatprep.subr.bf16.mxu0 %v514_v0  ;;  %494 = vmatprep.subr.bf16.mxu1 %v514_v0  ;;  %v516_v2 = vld [vmem:[#allocation4 + $0x28] sm:$0xff]   ;;  %v517_v3 = vld [vmem:[#allocation4 + $0x20] sm:$0xff]   ;;  %v518_v6 = vld [vmem:[#allocation4 + $0x18] sm:$0xff]  }
  0x1d   :  { %463 = vmatpush3.bf16.msra.mxu0 %v514_v0  ;;  %502 = vmatpush3.bf16.msra.mxu1 %v514_v0  ;;  %v522_v4 = vld [vmem:[#allocation2] sm:$0xff]   ;;  %v519_v7 = vld [vmem:[#allocation4 + $0x10] sm:$0xff]   ;;  %v520_v8 = vld [vmem:[#allocation4 + $0x8] sm:$0xff]  }
  0x1e   :  { %464 = vmatprep.subr.bf16.mxu0 %v515_v1  ;;  %495 = vmatprep.subr.bf16.mxu1 %v515_v1  ;;  %v523_v5 = vld [vmem:[#allocation2 + $0x20] sm:$0xff]   ;;  %v524_v10 = vld [vmem:[#allocation2 + $0x8] sm:$0xff]   ;;  %v526_v12 = vld [vmem:[#allocation2 + $0x10] sm:$0xff]  }
  0x1f   :  { %478 = vmatprep.mubr.bf16.mxu0 %v522_v4  ;;  %486 = vmatprep.mubr.bf16.mxu1 %v523_v5  ;;  %v521_v9 = vld [vmem:[#allocation4] sm:$0xff]   ;;  %v525_v11 = vld [vmem:[#allocation2 + $0x28] sm:$0xff]   ;;  %v527_v13 = vld [vmem:[#allocation2 + $0x30] sm:$0xff]  }
  0x20   :  { %v528_v14 = vld [vmem:[#allocation2 + $0x18] sm:$0xff]  }
  0x21   :  { %465 = vmatpush3.bf16.msra.mxu0 %v515_v1  ;;  %503 = vmatpush3.bf16.msra.mxu1 %v515_v1  ;;  %v529_v15 = vld [vmem:[#allocation2 + $0x38] sm:$0xff]  }
  0x22   :  { %466 = vmatprep.subr.bf16.mxu0 %v516_v2  ;;  %496 = vmatprep.subr.bf16.mxu1 %v516_v2 }
  0x25   :  { %467 = vmatpush3.bf16.msra.mxu0 %v516_v2  ;;  %504 = vmatpush3.bf16.msra.mxu1 %v516_v2 }
  0x26   :  { %468 = vmatprep.subr.bf16.mxu0 %v517_v3  ;;  %497 = vmatprep.subr.bf16.mxu1 %v517_v3 }
  0x29   :  { %469 = vmatpush3.bf16.msra.mxu0 %v517_v3  ;;  %505 = vmatpush3.bf16.msra.mxu1 %v517_v3 }
  0x2a   :  { %470 = vmatprep.subr.bf16.mxu0 %v518_v6  ;;  %498 = vmatprep.subr.bf16.mxu1 %v518_v6 }
  0x2d   :  { %471 = vmatpush3.bf16.msra.mxu0 %v518_v6  ;;  %506 = vmatpush3.bf16.msra.mxu1 %v518_v6 }
  0x2e   :  { %472 = vmatprep.subr.bf16.mxu0 %v519_v7  ;;  %499 = vmatprep.subr.bf16.mxu1 %v519_v7 }
  0x31   :  { %473 = vmatpush3.bf16.msra.mxu0 %v519_v7  ;;  %507 = vmatpush3.bf16.msra.mxu1 %v519_v7 }
  0x32   :  { %474 = vmatprep.subr.bf16.mxu0 %v520_v8  ;;  %500 = vmatprep.subr.bf16.mxu1 %v520_v8 }
  0x35   :  { %475 = vmatpush3.bf16.msra.mxu0 %v520_v8  ;;  %508 = vmatpush3.bf16.msra.mxu1 %v520_v8 }
  0x36   :  { %476 = vmatprep.subr.bf16.mxu0 %v521_v9  ;;  %501 = vmatprep.subr.bf16.mxu1 %v521_v9 }
  0x39   :  { %477 = vmatpush3.bf16.msra.mxu0 %v521_v9  ;;  %509 = vmatpush3.bf16.msra.mxu1 %v521_v9 }
  0x3c   :  { %479 = vmatmul.mubr.bf16.vlgmr.msra.gmra.mxu0 %v524_v10  ;;  %487 = vmatmul.mubr.bf16.vlgmr.msra.gmra.mxu1 %v525_v11 }
  0x3d   :  { %482 = vmatprep.mubr.bf16.mxu0 %v526_v12  ;;  %490 = vmatprep.mubr.bf16.mxu1 %v527_v13 }
  0x44   :  { %483 = vmatmul.mubr.bf16.gmra.mxu0 %v528_v14  ;;  %491 = vmatmul.mubr.bf16.gmra.mxu1 %v529_v15 }
  0xfc   :  { %v480_v16 = vpop.f32.mrf.mxu0  ;;  %v488_v17 = vpop.f32.mrf.mxu1 }
  0xfe   :  { %v202_v18 = vpop.f32.mrf.mxu0  ;;  %v234_v19 = vpop.f32.mrf.mxu1 }
 0x100   :  { %v481_v20 = vpop.f32.mrf.mxu0  ;;  %v489_v21 = vpop.f32.mrf.mxu1 }
 0x101   :  { %v407_v22 = vpack.c.bf16 %v481_v20, %v480_v16  ;;  %v427_v23 = vpack.c.bf16 %v489_v21, %v488_v17 }
 0x102   :  { %v205_v24 = vpop.f32.mrf.mxu0  ;;  %v237_v25 = vpop.f32.mrf.mxu1 }
 0x103   :  { %439 = vst [vmem:[%s625_s2 + $0x8] sm:$0xff] %v407_v22   ;;  %443 = vst [vmem:[%s625_s2 + $0x28] sm:$0xff] %v427_v23   ;;  %v402_v26 = vpack.c.bf16 %v205_v24, %v202_v18  ;;  %v422_v27 = vpack.c.bf16 %v237_v25, %v234_v19 }
 0x104   :  { %v484_v28 = vpop.f32.mrf.mxu0  ;;  %v492_v29 = vpop.f32.mrf.mxu1 }
 0x105   :  { %403 = vst [vmem:[%s625_s2] sm:$0xff] %v402_v26   ;;  %442 = vst [vmem:[%s625_s2 + $0x20] sm:$0xff] %v422_v27  }
 0x106   :  { %v218_v30 = vpop.f32.mrf.mxu0  ;;  %v250_v31 = vpop.f32.mrf.mxu1 }
 0x108   :  { %v485_v32 = vpop.f32.mrf.mxu0  ;;  %v493_v33 = vpop.f32.mrf.mxu1 }
 0x109   :  { %v417_v34 = vpack.c.bf16 %v485_v32, %v484_v28  ;;  %v437_v35 = vpack.c.bf16 %v493_v33, %v492_v29 }
 0x10a   :  { %v221_v36 = vpop.f32.mrf.mxu0  ;;  %v253_v37 = vpop.f32.mrf.mxu1 }
 0x10b   :  { %441 = vst [vmem:[%s625_s2 + $0x18] sm:$0xff] %v417_v34   ;;  %445 = vst [vmem:[%s625_s2 + $0x38] sm:$0xff] %v437_v35   ;;  %v412_v38 = vpack.c.bf16 %v221_v36, %v218_v30  ;;  %v432_v39 = vpack.c.bf16 %v253_v37, %v250_v31 }
 0x10d   :  { %440 = vst [vmem:[%s625_s2 + $0x10] sm:$0xff] %v412_v38   ;;  %444 = vst [vmem:[%s625_s2 + $0x30] sm:$0xff] %v432_v39  }
 0x10e   :  { %349 = vsyncpa [#allocation3], 1 }
 0x10f   :  { %350 = vsyncpa [#allocation5], 1 }

// kernel: gcn_anomaly_forward.5
= control target key start
LH: loop header
LB: loop body
LE: loop exit
PB: predicated region body
PF: predicated region fallthrough
CT: control target
= control target key end

     0   :  { %s1388_s1 = inlined_call_operand.vmem [shape: bf16[128,128], index: 1, kind: input, shape index: {}]   ;;  %s1389_s0 = inlined_call_operand.vmem [shape: bf16[128,128], index: 0, kind: input, shape index: {}]   ;;  %s1390_s3 = inlined_call_operand.vmem [shape: bf16[128,128], index: 3, kind: input, shape index: {}]   ;;  %s1391_s2 = inlined_call_operand.vmem [shape: f32[1,128], index: 2, kind: input, shape index: {}]   ;;  %s1392_s4 = inlined_call_operand.vmem [shape: f32[1,128], index: 4, kind: input, shape index: {}]   ;;  %s1393_s5 = inlined_call_operand.vmem [shape: f32[128,128], index: 5, kind: output, shape index: {}]  }
   0x1   :  { %v901_v0 = vld [vmem:[%s1388_s1 + $0x38] sm:$0xff]   ;;  %v902_v1 = vld [vmem:[%s1388_s1 + $0x30] sm:$0xff]   ;;  %v903_v2 = vld [vmem:[%s1388_s1 + $0x28] sm:$0xff]  }
   0x2   :  { %837 = vmatprep.subr.bf16.mxu0 %v901_v0  ;;  %v904_v3 = vld [vmem:[%s1388_s1 + $0x20] sm:$0xff]   ;;  %v905_v5 = vld [vmem:[%s1388_s1 + $0x18] sm:$0xff]   ;;  %v906_v6 = vld [vmem:[%s1388_s1 + $0x10] sm:$0xff]  }
   0x3   :  { %838 = vmatpush3.bf16.msra.mxu0 %v901_v0  ;;  %v909_v4 = vld [vmem:[%s1389_s0] sm:$0xff]   ;;  %v917_v7 = vld [vmem:[%s1390_s3 + $0x38] sm:$0xff]   ;;  %v918_v8 = vld [vmem:[%s1390_s3 + $0x30] sm:$0xff]  }
   0x4   :  { %839 = vmatprep.subr.bf16.mxu0 %v902_v1  ;;  %853 = vmatprep.mubr.bf16.mxu0 %v909_v4  ;;  %v907_v9 = vld [vmem:[%s1388_s1 + $0x8] sm:$0xff]   ;;  %v908_v11 = vld [vmem:[%s1388_s1] sm:$0xff]   ;;  %v921_v13 = vld [vmem:[%s1390_s3 + $0x18] sm:$0xff]  }
   0x5   :  { %869 = vmatprep.subr.bf16.mxu1 %v917_v7  ;;  %v919_v10 = vld [vmem:[%s1390_s3 + $0x28] sm:$0xff]   ;;  %v920_v12 = vld [vmem:[%s1390_s3 + $0x20] sm:$0xff]   ;;  %v911_v15 = vld [vmem:[%s1389_s0 + $0x10] sm:$0xff]  }
   0x6   :  { %870 = vmatpush3.bf16.msra.mxu1 %v917_v7  ;;  %v910_v14 = vld [vmem:[%s1389_s0 + $0x8] sm:$0xff]   ;;  %v912_v16 = vld [vmem:[%s1389_s0 + $0x18] sm:$0xff]   ;;  %v913_v17 = vld [vmem:[%s1389_s0 + $0x20] sm:$0xff]  }
   0x7   :  { %840 = vmatpush3.bf16.msra.mxu0 %v902_v1  ;;  %871 = vmatprep.subr.bf16.mxu1 %v918_v8  ;;  %v914_v18 = vld [vmem:[%s1389_s0 + $0x28] sm:$0xff]   ;;  %v915_v19 = vld [vmem:[%s1389_s0 + $0x30] sm:$0xff]   ;;  %v916_v20 = vld [vmem:[%s1389_s0 + $0x38] sm:$0xff]  }
   0x8   :  { %841 = vmatprep.subr.bf16.mxu0 %v903_v2  ;;  %v922_v21 = vld [vmem:[%s1390_s3 + $0x10] sm:$0xff]   ;;  %v923_v22 = vld [vmem:[%s1390_s3 + $0x8] sm:$0xff]   ;;  %v924_v23 = vld [vmem:[%s1390_s3] sm:$0xff]  }
   0x9   :  { %v795_v26 = vld [vmem:[%s1391_s2] ss:$0 sm:$0xff] }
   0xa   :  { %872 = vmatpush3.bf16.msra.mxu1 %v918_v8 }
   0xb   :  { %842 = vmatpush3.bf16.msra.mxu0 %v903_v2  ;;  %873 = vmatprep.subr.bf16.mxu1 %v919_v10 }
   0xc   :  { %843 = vmatprep.subr.bf16.mxu0 %v904_v3 }
   0xe   :  { %874 = vmatpush3.bf16.msra.mxu1 %v919_v10 }
   0xf   :  { %844 = vmatpush3.bf16.msra.mxu0 %v904_v3  ;;  %875 = vmatprep.subr.bf16.mxu1 %v920_v12 }
  0x10   :  { %845 = vmatprep.subr.bf16.mxu0 %v905_v5 }
  0x12   :  { %876 = vmatpush3.bf16.msra.mxu1 %v920_v12 }
  0x13   :  { %846 = vmatpush3.bf16.msra.mxu0 %v905_v5  ;;  %877 = vmatprep.subr.bf16.mxu1 %v921_v13 }
  0x14   :  { %847 = vmatprep.subr.bf16.mxu0 %v906_v6 }
  0x16   :  { %878 = vmatpush3.bf16.msra.mxu1 %v921_v13 }
  0x17   :  { %848 = vmatpush3.bf16.msra.mxu0 %v906_v6  ;;  %879 = vmatprep.subr.bf16.mxu1 %v922_v21 }
  0x18   :  { %849 = vmatprep.subr.bf16.mxu0 %v907_v9 }
  0x1a   :  { %880 = vmatpush3.bf16.msra.mxu1 %v922_v21 }
  0x1b   :  { %850 = vmatpush3.bf16.msra.mxu0 %v907_v9  ;;  %881 = vmatprep.subr.bf16.mxu1 %v923_v22 }
  0x1c   :  { %851 = vmatprep.subr.bf16.mxu0 %v908_v11 }
  0x1e   :  { %882 = vmatpush3.bf16.msra.mxu1 %v923_v22 }
  0x1f   :  { %852 = vmatpush3.bf16.msra.mxu0 %v908_v11  ;;  %883 = vmatprep.subr.bf16.mxu1 %v924_v23 }
  0x22   :  { %854 = vmatmul.mubr.bf16.vlgmr.msra.gmra.mxu0 %v910_v14  ;;  %884 = vmatpush3.bf16.msra.mxu1 %v924_v23 }
  0x23   :  { %857 = vmatprep.mubr.bf16.mxu0 %v911_v15 }
  0x2a   :  { %858 = vmatmul.mubr.bf16.gmra.mxu0 %v912_v16 }
  0x2b   :  { %861 = vmatprep.mubr.bf16.mxu0 %v913_v17  ;;  %v548_v17 = vlaneseq }
  0x32   :  { %862 = vmatmul.mubr.bf16.gmra.mxu0 %v914_v18  ;;  %v1094_v18 = vand.u32 127, %v548_v17 }
  0x33   :  { %865 = vmatprep.mubr.bf16.mxu0 %v915_v19  ;;  %v796_v19 = vld [vmem:[%s1392_s4] ss:$0 sm:$0xff] }
  0x34   :  { %vm550_vm0 = vcmp.lt.s32.totalorder %v1094_v18, 2 }
  0x3a   :  { %866 = vmatmul.mubr.bf16.gmra.mxu0 %v916_v20 }
  0xe2   :  { %v855_v24 = vpop.f32.mrf.mxu0 }
  0xe3   :  { %v342_v30 = vadd.f32 %v855_v24, %v795_v26 }
  0xe4   :  { %v219_v25 = vpop.f32.mrf.mxu0 }
  0xe5   :  { %v340_v28 = vadd.f32 %v795_v26, %v219_v25  ;;  %v358_v37 = vmax.f32 %v342_v30, 0.0 }
  0xe6   :  { %v856_v27 = vpop.f32.mrf.mxu0 }
  0xe7   :  { %v343_v29 = vadd.f32 %v856_v27, %v795_v26  ;;  %v356_v35 = vmax.f32 %v340_v28, 0.0 }
  0xe8   :  { %v222_v31 = vpop.f32.mrf.mxu0 }
  0xe9   :  { %v341_v32 = vadd.f32 %v795_v26, %v222_v31  ;;  %v359_v33 = vmax.f32 %v343_v29, 0.0 }
  0xea   :  { %v859_v34 = vpop.f32.mrf.mxu0 }
  0xeb   :  { %v357_v36 = vmax.f32 %v341_v32, 0.0  ;;  %v373_v40 = vpack.c.bf16 %v359_v33, %v358_v37  ;;  %v346_v44 = vadd.f32 %v859_v34, %v795_v26 }
  0xec   :  { %v235_v38 = vpop.f32.mrf.mxu0 }
  0xed   :  { %v372_v39 = vpack.c.bf16 %v357_v36, %v356_v35  ;;  %v344_v42 = vadd.f32 %v795_v26, %v235_v38  ;;  %v362_v51 = vmax.f32 %v346_v44, 0.0 }
  0xee   :  { %v860_v41 = vpop.f32.mrf.mxu0 }
  0xef   :  { %v347_v43 = vadd.f32 %v860_v41, %v795_v26  ;;  %885 = vmatprep.mubr.bf16.mxu1 %v372_v39  ;;  %v360_v49 = vmax.f32 %v344_v42, 0.0 }
  0xf0   :  { %v238_v45 = vpop.f32.mrf.mxu0  ;;  %886 = vmatmul.mubr.bf16.vlgmr.msra.gmra.mxu1 %v373_v40 }
  0xf1   :  { %v345_v46 = vadd.f32 %v795_v26, %v238_v45  ;;  %v363_v47 = vmax.f32 %v347_v43, 0.0 }
  0xf2   :  { %v863_v48 = vpop.f32.mrf.mxu0 }
  0xf3   :  { %v361_v50 = vmax.f32 %v345_v46, 0.0  ;;  %v375_v54 = vpack.c.bf16 %v363_v47, %v362_v51  ;;  %v350_v58 = vadd.f32 %v863_v48, %v795_v26 }
  0xf4   :  { %v251_v52 = vpop.f32.mrf.mxu0 }
  0xf5   :  { %v374_v53 = vpack.c.bf16 %v361_v50, %v360_v49  ;;  %v348_v56 = vadd.f32 %v795_v26, %v251_v52  ;;  %v366_v1 = vmax.f32 %v350_v58, 0.0 }
  0xf6   :  { %v864_v55 = vpop.f32.mrf.mxu0 }
  0xf7   :  { %v351_v57 = vadd.f32 %v864_v55, %v795_v26  ;;  %889 = vmatprep.mubr.bf16.mxu1 %v374_v53  ;;  %v364_v63 = vmax.f32 %v348_v56, 0.0 }
  0xf8   :  { %v254_v59 = vpop.f32.mrf.mxu0  ;;  %890 = vmatmul.mubr.bf16.gmra.mxu1 %v375_v54 }
  0xf9   :  { %v349_v60 = vadd.f32 %v795_v26, %v254_v59  ;;  %v367_v61 = vmax.f32 %v351_v57, 0.0 }
  0xfa   :  { %v867_v62 = vpop.f32.mrf.mxu0 }
  0xfb   :  { %v365_v0 = vmax.f32 %v349_v60, 0.0  ;;  %v377_v4 = vpack.c.bf16 %v367_v61, %v366_v1  ;;  %v354_v8 = vadd.f32 %v867_v62, %v795_v26 }
  0xfc   :  { %v267_v2 = vpop.f32.mrf.mxu0 }
  0xfd   :  { %v376_v3 = vpack.c.bf16 %v365_v0, %v364_v63  ;;  %v352_v6 = vadd.f32 %v795_v26, %v267_v2  ;;  %v370_v14 = vmax.f32 %v354_v8, 0.0 }
  0xfe   :  { %v868_v5 = vpop.f32.mrf.mxu0 }
  0xff   :  { %v355_v7 = vadd.f32 %v868_v5, %v795_v26  ;;  %893 = vmatprep.mubr.bf16.mxu1 %v376_v3  ;;  %v368_v12 = vmax.f32 %v352_v6, 0.0 }
 0x100   :  { %v270_v9 = vpop.f32.mrf.mxu0  ;;  %894 = vmatmul.mubr.bf16.gmra.mxu1 %v377_v4 }
 0x101   :  { %v353_v10 = vadd.f32 %v795_v26, %v270_v9  ;;  %v371_v11 = vmax.f32 %v355_v7, 0.0 }
 0x103   :  { %v369_v13 = vmax.f32 %v353_v10, 0.0  ;;  %v379_v16 = vpack.c.bf16 %v371_v11, %v370_v14 }
 0x105   :  { %v378_v15 = vpack.c.bf16 %v369_v13, %v368_v12 }
 0x107   :  { %897 = vmatprep.mubr.bf16.mxu1 %v378_v15 }
 0x108   :  { %898 = vmatmul.mubr.bf16.gmra.mxu1 %v379_v16 }
 0x1b0   :  { %v887_v20 = vpop.f32.mrf.mxu1 }
 0x1b1   :  { %v1100_v21 = vadd.f32 %v887_v20, %v796_v19 }
 0x1b2   :  { %v485_v22 = vpop.f32.mrf.mxu1 }
 0x1b3   :  { %v1102_v23 = vadd.f32 %v796_v19, %v485_v22  ;;  %v1107_v24 = vsel %vm550_vm0, %v1100_v21, -1e+30 }
 0x1b4   :  { %571 = vmax.xlane.f32.xlu1 %v1107_v24  ;;  %v888_v25 = vpop.f32.mrf.mxu1 }
 0x1b5   :  { %v1110_v26 = vadd.f32 %v888_v25, %v796_v19  ;;  %v1115_v27 = vsel %vm550_vm0, %v1102_v23, -1e+30 }
 0x1b6   :  { %v488_v28 = vpop.f32.mrf.mxu1  ;;  %567 = vmax.xlane.f32.xlu0 %v1115_v27 }
 0x1b7   :  { %v1118_v29 = vadd.f32 %v796_v19, %v488_v28  ;;  %v1123_v30 = vsel %vm550_vm0, %v1110_v26, -1e+30 }
 0x1b8   :  { %573 = vmax.xlane.f32.xlu1 %v1123_v30  ;;  %v891_v31 = vpop.f32.mrf.mxu1 }
 0x1b9   :  { %v1126_v32 = vadd.f32 %v891_v31, %v796_v19  ;;  %v552_v33 = vsel %vm550_vm0, %v1118_v29, -1e+30 }
 0x1ba   :  { %569 = vmax.xlane.f32.xlu0 %v552_v33  ;;  %v501_v34 = vpop.f32.mrf.mxu1 }
 0x1bb   :  { %v1131_v36 = vadd.f32 %v796_v19, %v501_v34  ;;  %v557_v38 = vsel %vm550_vm0, %v1126_v32, -1e+30 }
 0x1bc   :  { %v892_v35 = vpop.f32.mrf.mxu1 }
 0x1bd   :  { %v1133_v37 = vadd.f32 %v892_v35, %v796_v19  ;;  %v555_v44 = vsel %vm550_vm0, %v1131_v36, -1e+30 }
 0x1be   :  { %579 = vmax.xlane.f32.xlu0 %v557_v38  ;;  %v504_v39 = vpop.f32.mrf.mxu1 }
 0x1bf   :  { %v1138_v40 = vadd.f32 %v796_v19, %v504_v39  ;;  %v558_v41 = vsel %vm550_vm0, %v1133_v37, -1e+30 }
 0x1c0   :  { %581 = vmax.xlane.f32.xlu1 %v558_v41  ;;  %v895_v42 = vpop.f32.mrf.mxu1 }
 0x1c1   :  { %v1143_v43 = vadd.f32 %v895_v42, %v796_v19  ;;  %v1151_v46 = vsel %vm550_vm0, %v1138_v40, -1e+30 }
 0x1c2   :  { %575 = vmax.xlane.f32.xlu0 %v555_v44  ;;  %v517_v45 = vpop.f32.mrf.mxu1 }
 0x1c3   :  { %v1154_v48 = vadd.f32 %v796_v19, %v517_v45  ;;  %v1161_v50 = vsel %vm550_vm0, %v1143_v43, -1e+30 }
 0x1c4   :  { %577 = vmax.xlane.f32.xlu1 %v1151_v46  ;;  %v896_v47 = vpop.f32.mrf.mxu1 }
 0x1c5   :  { %v1156_v49 = vadd.f32 %v896_v47, %v796_v19  ;;  %v1175_v55 = vsel %vm550_vm0, %v1154_v48, -1e+30 }
 0x1c6   :  { %587 = vmax.xlane.f32.xlu0 %v1161_v50  ;;  %v520_v51 = vpop.f32.mrf.mxu1 }
 0x1c7   :  { %v1164_v52 = vadd.f32 %v796_v19, %v520_v51  ;;  %v1169_v53 = vsel %vm550_vm0, %v1156_v49, -1e+30 }
 0x1c8   :  { %589 = vmax.xlane.f32.xlu1 %v1169_v53  ;;  %v899_v54 = vpop.f32.mrf.mxu1 }
 0x1c9   :  { %v1183_v58 = vsel %vm550_vm0, %v1164_v52, -1e+30  ;;  %v1186_v60 = vadd.f32 %v899_v54, %v796_v19 }
 0x1ca   :  { %583 = vmax.xlane.f32.xlu0 %v1175_v55  ;;  %v533_v56 = vpop.f32.mrf.mxu1 }
 0x1cb   :  { %v1178_v57 = vadd.f32 %v796_v19, %v533_v56  ;;  %v1206_v2 = vsel %vm550_vm0, %v1186_v60, -1e+30 }
 0x1cc   :  { %585 = vmax.xlane.f32.xlu1 %v1183_v58  ;;  %v900_v59 = vpop.f32.mrf.mxu1 }
 0x1cd   :  { %v1191_v61 = vsel %vm550_vm0, %v1178_v57, -1e+30  ;;  %v1196_v0 = vadd.f32 %v900_v59, %v796_v19 }
 0x1ce   :  { %v536_v62 = vpop.f32.mrf.mxu1  ;;  %591 = vmax.xlane.f32.xlu0 %v1191_v61 }
 0x1cf   :  { %v1194_v63 = vadd.f32 %v796_v19, %v536_v62  ;;  %v1213_v3 = vsel %vm550_vm0, %v1196_v0, -1e+30 }
 0x1d1   :  { %v1201_v1 = vsel %vm550_vm0, %v1194_v63, -1e+30 }
 0x1d2   :  { %593 = vmax.xlane.f32.xlu1 %v1201_v1  ;;  %595 = vmax.xlane.f32.xlu0 %v1206_v2 }
 0x1d6   :  { %597 = vmax.xlane.f32.xlu1 %v1213_v3 }
 0x23d   :  { %v1216_v4 = vpop.xlane.xlu1 %571 }
 0x23e   :  { %v601_v5 = vsub.f32 %v1107_v24, %v1216_v4 }
 0x23f   :  { %v1220_v6 = vpop.xlane.xlu0 %567 }
 0x240   :  { %v619_v7 = vmul.f32 1.442695, %v601_v5  ;;  %v599_v8 = vsub.f32 %v1115_v27, %v1220_v6 }
 0x241   :  { %v1224_v9 = vpop.xlane.xlu1 %573 }
 0x242   :  { %925 = vpow2.f32 %v619_v7  ;;  %v615_v10 = vmul.f32 1.442695, %v599_v8  ;;  %v602_v11 = vsub.f32 %v1123_v30, %v1224_v9 }
 0x243   :  { %v1228_v12 = vpop.xlane.xlu0 %569 }
 0x244   :  { %927 = vpow2.f32 %v615_v10  ;;  %v621_v13 = vmul.f32 1.442695, %v602_v11  ;;  %v600_v14 = vsub.f32 %v552_v33, %v1228_v12 }
 0x246   :  { %929 = vpow2.f32 %v621_v13  ;;  %v617_v15 = vmul.f32 1.442695, %v600_v14 }
 0x247   :  { %v1231_v16 = vpop.xlane.xlu0 %579 }
 0x248   :  { %931 = vpow2.f32 %v617_v15  ;;  %v605_v17 = vsub.f32 %v557_v38, %v1231_v16 }
 0x249   :  { %v1234_v19 = vpop.xlane.xlu1 %581 }
 0x24a   :  { %v627_v20 = vmul.f32 1.442695, %v605_v17  ;;  %v606_v22 = vsub.f32 %v558_v41, %v1234_v19 }
 0x24b   :  { %v1237_v24 = vpop.xlane.xlu0 %575 }
 0x24c   :  { %933 = vpow2.f32 %v627_v20  ;;  %v629_v25 = vmul.f32 1.442695, %v606_v22  ;;  %v603_v27 = vsub.f32 %v555_v44, %v1237_v24 }
 0x24d   :  { %v1240_v28 = vpop.xlane.xlu1 %577 }
 0x24e   :  { %935 = vpow2.f32 %v629_v25  ;;  %v623_v30 = vmul.f32 1.442695, %v603_v27  ;;  %v604_v31 = vsub.f32 %v1151_v46, %v1240_v28 }
 0x24f   :  { %v926_v33 = vpop.eup %925  ;;  %v1244_v34 = vpop.xlane.xlu0 %587 }
 0x250   :  { %937 = vpow2.f32 %v623_v30  ;;  %v625_v35 = vmul.f32 1.442695, %v604_v31  ;;  %v609_v38 = vsub.f32 %v1161_v50, %v1244_v34  ;;  %v649_v39 = vsel %vm550_vm0, %v926_v33, 0.0 }
 0x251   :  { %v928_v41 = vpop.eup %927  ;;  %v1250_v42 = vpop.xlane.xlu1 %589  ;;  %667 = vadd.xlane.f32.xlu0 %v649_v39 }
 0x252   :  { %939 = vpow2.f32 %v625_v35  ;;  %v635_v44 = vmul.f32 1.442695, %v609_v38  ;;  %v610_v45 = vsub.f32 %v1169_v53, %v1250_v42  ;;  %v647_v51 = vsel %vm550_vm0, %v928_v41, 0.0 }
 0x253   :  { %v930_v46 = vpop.eup %929  ;;  %v1254_v47 = vpop.xlane.xlu0 %583 }
 0x254   :  { %941 = vpow2.f32 %v635_v44  ;;  %v637_v50 = vmul.f32 1.442695, %v610_v45  ;;  %v607_v54 = vsub.f32 %v1175_v55, %v1254_v47  ;;  %v650_v56 = vsel %vm550_vm0, %v930_v46, 0.0 }
 0x255   :  { %v932_v59 = vpop.eup %931  ;;  %v1262_v62 = vpop.xlane.xlu1 %585  ;;  %669 = vadd.xlane.f32.xlu1 %v650_v56  ;;  %663 = vadd.xlane.f32.xlu0 %v647_v51 }
 0x256   :  { %943 = vpow2.f32 %v637_v50  ;;  %v631_v53 = vmul.f32 1.442695, %v607_v54  ;;  %v608_v5 = vsub.f32 %v1183_v58, %v1262_v62  ;;  %v648_v10 = vsel %vm550_vm0, %v932_v59, 0.0 }
 0x257   :  { %v1266_v7 = vpop.xlane.xlu0 %591 }
 0x258   :  { %945 = vpow2.f32 %v631_v53  ;;  %v633_v8 = vmul.f32 1.442695, %v608_v5  ;;  %v611_v55 = vsub.f32 %v1191_v61, %v1266_v7 }
 0x259   :  { %v934_v11 = vpop.eup %933  ;;  %665 = vadd.xlane.f32.xlu1 %v648_v10 }
 0x25a   :  { %947 = vpow2.f32 %v633_v8  ;;  %v639_v13 = vmul.f32 1.442695, %v611_v55  ;;  %v653_v14 = vsel %vm550_vm0, %v934_v11, 0.0 }
 0x25b   :  { %v936_v15 = vpop.eup %935  ;;  %v1274_v17 = vpop.xlane.xlu1 %593  ;;  %675 = vadd.xlane.f32.xlu0 %v653_v14 }
 0x25c   :  { %v1276_v58 = vpop.xlane.xlu0 %595  ;;  %949 = vpow2.f32 %v639_v13  ;;  %v612_v61 = vsub.f32 %v1201_v1, %v1274_v17  ;;  %v654_v22 = vsel %vm550_vm0, %v936_v15, 0.0 }
 0x25d   :  { %v613_v20 = vsub.f32 %v1206_v2, %v1276_v58  ;;  %v938_v25 = vpop.eup %937  ;;  %677 = vadd.xlane.f32.xlu1 %v654_v22 }
 0x25e   :  { %v641_v27 = vmul.f32 1.442695, %v612_v61  ;;  %v651_v31 = vsel %vm550_vm0, %v938_v25, 0.0 }
 0x25f   :  { %v643_v30 = vmul.f32 1.442695, %v613_v20  ;;  %v940_v33 = vpop.eup %939  ;;  %v1286_v35 = vpop.xlane.xlu1 %597  ;;  %671 = vadd.xlane.f32.xlu0 %v651_v31 }
 0x260   :  { %951 = vpow2.f32 %v641_v27  ;;  %v614_v1 = vsub.f32 %v1213_v3, %v1286_v35  ;;  %v652_v2 = vsel %vm550_vm0, %v940_v33, 0.0 }
 0x261   :  { %v942_v38 = vpop.eup %941  ;;  %953 = vpow2.f32 %v643_v30  ;;  %673 = vadd.xlane.f32.xlu1 %v652_v2 }
 0x262   :  { %v645_v39 = vmul.f32 1.442695, %v614_v1  ;;  %v657_v41 = vsel %vm550_vm0, %v942_v38, 0.0 }
 0x263   :  { %v944_v44 = vpop.eup %943  ;;  %683 = vadd.xlane.f32.xlu0 %v657_v41 }
 0x264   :  { %955 = vpow2.f32 %v645_v39  ;;  %v658_v45 = vsel %vm550_vm0, %v944_v44, 0.0 }
 0x265   :  { %v946_v46 = vpop.eup %945  ;;  %685 = vadd.xlane.f32.xlu1 %v658_v45 }
 0x266   :  { %v655_v3 = vsel %vm550_vm0, %v946_v46, 0.0 }
 0x267   :  { %v948_v51 = vpop.eup %947  ;;  %679 = vadd.xlane.f32.xlu0 %v655_v3 }
 0x268   :  { %v656_v50 = vsel %vm550_vm0, %v948_v51, 0.0 }
 0x269   :  { %v950_v54 = vpop.eup %949  ;;  %681 = vadd.xlane.f32.xlu1 %v656_v50 }
 0x26a   :  { %v659_v56 = vsel %vm550_vm0, %v950_v54, 0.0 }
 0x26b   :  { %687 = vadd.xlane.f32.xlu0 %v659_v56 }
 0x26d   :  { %v952_v59 = vpop.eup %951 }
 0x26e   :  { %v954_v53 = vpop.eup %953  ;;  %v660_v5 = vsel %vm550_vm0, %v952_v59, 0.0 }
 0x26f   :  { %689 = vadd.xlane.f32.xlu1 %v660_v5  ;;  %v661_v8 = vsel %vm550_vm0, %v954_v53, 0.0 }
 0x270   :  { %691 = vadd.xlane.f32.xlu0 %v661_v8 }
 0x271   :  { %v956_v55 = vpop.eup %955 }
 0x272   :  { %v662_v10 = vsel %vm550_vm0, %v956_v55, 0.0 }
 0x273   :  { %693 = vadd.xlane.f32.xlu1 %v662_v10 }
 0x2da   :  { %v668_v11 = vpop.xlane.xlu0 %667 }
 0x2db   :  { %957 = vlog2.f32 %v668_v11 }
 0x2de   :  { %v670_v13 = vpop.xlane.xlu1 %669  ;;  %v664_v14 = vpop.xlane.xlu0 %663 }
 0x2df   :  { %959 = vlog2.f32 %v670_v13 }
 0x2e0   :  { %961 = vlog2.f32 %v664_v14 }
 0x2e2   :  { %v666_v15 = vpop.xlane.xlu1 %665 }
 0x2e3   :  { %963 = vlog2.f32 %v666_v15 }
 0x2e4   :  { %v676_v61 = vpop.xlane.xlu0 %675 }
 0x2e5   :  { %965 = vlog2.f32 %v676_v61 }
 0x2e6   :  { %v678_v20 = vpop.xlane.xlu1 %677 }
 0x2e7   :  { %967 = vlog2.f32 %v678_v20 }
 0x2e8   :  { %v958_v22 = vpop.eup %957  ;;  %v672_v25 = vpop.xlane.xlu0 %671 }
 0x2e9   :  { %v700_v27 = vmul.f32 0.6931472, %v958_v22  ;;  %969 = vlog2.f32 %v672_v25 }
 0x2ea   :  { %v674_v30 = vpop.xlane.xlu1 %673 }
 0x2eb   :  { %v729_v18 = vadd.f32 %v700_v27, %v1216_v4  ;;  %971 = vlog2.f32 %v674_v30 }
 0x2ec   :  { %v960_v31 = vpop.eup %959  ;;  %v684_v33 = vpop.xlane.xlu0 %683 }
 0x2ed   :  { %v962_v1 = vpop.eup %961  ;;  %v745_v2 = vsub.f32 %v1100_v21, %v729_v18  ;;  %v702_v38 = vmul.f32 0.6931472, %v960_v31  ;;  %973 = vlog2.f32 %v684_v33 }
 0x2ee   :  { %v696_v39 = vmul.f32 0.6931472, %v962_v1  ;;  %v686_v41 = vpop.xlane.xlu1 %685 }
 0x2ef   :  { %761 = vst [vmem:[%s1393_s5 + $0x10] sm:$0xff] %v745_v2  ;;  %v730_v44 = vadd.f32 %v702_v38, %v1224_v9  ;;  %975 = vlog2.f32 %v686_v41 }
 0x2f0   :  { %v964_v45 = vpop.eup %963  ;;  %v727_v4 = vadd.f32 %v696_v39, %v1220_v6  ;;  %v680_v46 = vpop.xlane.xlu0 %679 }
 0x2f1   :  { %v746_v3 = vsub.f32 %v1110_v26, %v730_v44  ;;  %v698_v51 = vmul.f32 0.6931472, %v964_v45  ;;  %977 = vlog2.f32 %v680_v46 }
 0x2f2   :  { %v966_v21 = vpop.eup %965  ;;  %v743_v50 = vsub.f32 %v1102_v23, %v727_v4  ;;  %v682_v54 = vpop.xlane.xlu1 %681 }
 0x2f3   :  { %762 = vst [vmem:[%s1393_s5 + $0x18] sm:$0xff] %v746_v3  ;;  %v728_v56 = vadd.f32 %v698_v51, %v1228_v12  ;;  %v708_v9 = vmul.f32 0.6931472, %v966_v21  ;;  %979 = vlog2.f32 %v682_v54 }
 0x2f4   :  { %v968_v59 = vpop.eup %967  ;;  %759 = vst [vmem:[%s1393_s5] sm:$0xff] %v743_v50  ;;  %v688_v26 = vpop.xlane.xlu0 %687 }
 0x2f5   :  { %v744_v6 = vsub.f32 %v1118_v29, %v728_v56  ;;  %v733_v53 = vadd.f32 %v708_v9, %v1231_v16  ;;  %v710_v23 = vmul.f32 0.6931472, %v968_v59  ;;  %981 = vlog2.f32 %v688_v26 }
 0x2f6   :  { %v970_v5 = vpop.eup %969 }
 0x2f7   :  { %760 = vst [vmem:[%s1393_s5 + $0x8] sm:$0xff] %v744_v6  ;;  %v749_v12 = vsub.f32 %v1126_v32, %v733_v53  ;;  %v734_v8 = vadd.f32 %v710_v23, %v1234_v19  ;;  %v704_v55 = vmul.f32 0.6931472, %v970_v5 }
 0x2f8   :  { %v972_v10 = vpop.eup %971  ;;  %v690_v11 = vpop.xlane.xlu1 %689 }
 0x2f9   :  { %765 = vst [vmem:[%s1393_s5 + $0x30] sm:$0xff] %v749_v12  ;;  %v750_v29 = vsub.f32 %v1133_v37, %v734_v8  ;;  %v731_v16 = vadd.f32 %v704_v55, %v1237_v24  ;;  %v706_v13 = vmul.f32 0.6931472, %v972_v10  ;;  %983 = vlog2.f32 %v690_v11  ;;  %v692_v14 = vpop.xlane.xlu0 %691 }
 0x2fa   :  { %v974_v15 = vpop.eup %973  ;;  %985 = vlog2.f32 %v692_v14 }
 0x2fb   :  { %766 = vst [vmem:[%s1393_s5 + $0x38] sm:$0xff] %v750_v29  ;;  %v747_v32 = vsub.f32 %v1131_v36, %v731_v16  ;;  %v732_v19 = vadd.f32 %v706_v13, %v1240_v28  ;;  %v716_v61 = vmul.f32 0.6931472, %v974_v15 }
 0x2fc   :  { %v976_v20 = vpop.eup %975  ;;  %v694_v22 = vpop.xlane.xlu1 %693 }
 0x2fd   :  { %763 = vst [vmem:[%s1393_s5 + $0x20] sm:$0xff] %v747_v32  ;;  %v748_v37 = vsub.f32 %v1138_v40, %v732_v19  ;;  %v737_v24 = vadd.f32 %v716_v61, %v1244_v34  ;;  %v718_v25 = vmul.f32 0.6931472, %v976_v20  ;;  %987 = vlog2.f32 %v694_v22 }
 0x2fe   :  { %v978_v27 = vpop.eup %977 }
 0x2ff   :  { %764 = vst [vmem:[%s1393_s5 + $0x28] sm:$0xff] %v748_v37  ;;  %v753_v36 = vsub.f32 %v1143_v43, %v737_v24  ;;  %v738_v28 = vadd.f32 %v718_v25, %v1250_v42  ;;  %v712_v30 = vmul.f32 0.6931472, %v978_v27 }
 0x300   :  { %v980_v18 = vpop.eup %979 }
 0x301   :  { %769 = vst [vmem:[%s1393_s5 + $0x50] sm:$0xff] %v753_v36  ;;  %v754_v40 = vsub.f32 %v1156_v49, %v738_v28  ;;  %v735_v34 = vadd.f32 %v712_v30, %v1254_v47  ;;  %v714_v31 = vmul.f32 0.6931472, %v980_v18 }
 0x302   :  { %v982_v33 = vpop.eup %981 }
 0x303   :  { %770 = vst [vmem:[%s1393_s5 + $0x58] sm:$0xff] %v754_v40  ;;  %v751_v43 = vsub.f32 %v1154_v48, %v735_v34  ;;  %v736_v42 = vadd.f32 %v714_v31, %v1262_v62  ;;  %v720_v1 = vmul.f32 0.6931472, %v982_v33 }
 0x305   :  { %767 = vst [vmem:[%s1393_s5 + $0x40] sm:$0xff] %v751_v43  ;;  %v752_v2 = vsub.f32 %v1164_v52, %v736_v42  ;;  %v739_v49 = vadd.f32 %v720_v1, %v1266_v7 }
 0x306   :  { %v984_v47 = vpop.eup %983 }
 0x307   :  { %v986_v38 = vpop.eup %985  ;;  %768 = vst [vmem:[%s1393_s5 + $0x48] sm:$0xff] %v752_v2  ;;  %v755_v39 = vsub.f32 %v1178_v57, %v739_v49  ;;  %v722_v48 = vmul.f32 0.6931472, %v984_v47 }
 0x308   :  { %v724_v41 = vmul.f32 0.6931472, %v986_v38 }
 0x309   :  { %771 = vst [vmem:[%s1393_s5 + $0x60] sm:$0xff] %v755_v39  ;;  %v740_v62 = vadd.f32 %v722_v48, %v1274_v17 }
 0x30a   :  { %v988_v44 = vpop.eup %987  ;;  %v741_v52 = vadd.f32 %v724_v41, %v1276_v58 }
 0x30b   :  { %v756_v7 = vsub.f32 %v1194_v63, %v740_v62  ;;  %v726_v45 = vmul.f32 0.6931472, %v988_v44 }
 0x30c   :  { %v757_v4 = vsub.f32 %v1186_v60, %v741_v52 }
 0x30d   :  { %772 = vst [vmem:[%s1393_s5 + $0x68] sm:$0xff] %v756_v7  ;;  %v742_v57 = vadd.f32 %v726_v45, %v1286_v35 }
 0x30e   :  { %773 = vst [vmem:[%s1393_s5 + $0x70] sm:$0xff] %v757_v4 }
 0x30f   :  { %v758_v17 = vsub.f32 %v1196_v0, %v742_v57 }
 0x311   :  { %774 = vst [vmem:[%s1393_s5 + $0x78] sm:$0xff] %v758_v17 }

// kernel: gcn_anomaly_forward.4
= control target key start
LH: loop header
LB: loop body
LE: loop exit
PB: predicated region body
PF: predicated region fallthrough
CT: control target
= control target key end

     0   :  { %s970_s1 = inlined_call_operand.vmem [shape: bf16[128,128], index: 1, kind: input, shape index: {}]   ;;  %s971_s0 = inlined_call_operand.vmem [shape: bf16[128,128], index: 0, kind: input, shape index: {}]   ;;  %s972_s3 = inlined_call_operand.vmem [shape: bf16[128,128], index: 3, kind: input, shape index: {}]   ;;  %s973_s2 = inlined_call_operand.vmem [shape: f32[1,128], index: 2, kind: input, shape index: {}]   ;;  %s974_s4 = inlined_call_operand.vmem [shape: bf16[128,128], index: 4, kind: output, shape index: {}]  }
   0x1   :  { %v822_v0 = vld [vmem:[%s970_s1 + $0x38] sm:$0xff]   ;;  %v823_v1 = vld [vmem:[%s970_s1 + $0x30] sm:$0xff]   ;;  %v824_v2 = vld [vmem:[%s970_s1 + $0x28] sm:$0xff]  }
   0x2   :  { %758 = vmatprep.subr.bf16.mxu0 %v822_v0  ;;  %v825_v3 = vld [vmem:[%s970_s1 + $0x20] sm:$0xff]   ;;  %v826_v5 = vld [vmem:[%s970_s1 + $0x18] sm:$0xff]   ;;  %v827_v6 = vld [vmem:[%s970_s1 + $0x10] sm:$0xff]  }
   0x3   :  { %759 = vmatpush3.bf16.msra.mxu0 %v822_v0  ;;  %v830_v4 = vld [vmem:[%s971_s0] sm:$0xff]   ;;  %v838_v7 = vld [vmem:[%s972_s3 + $0x38] sm:$0xff]   ;;  %v839_v8 = vld [vmem:[%s972_s3 + $0x30] sm:$0xff]  }
   0x4   :  { %760 = vmatprep.subr.bf16.mxu0 %v823_v1  ;;  %774 = vmatprep.mubr.bf16.mxu0 %v830_v4  ;;  %v828_v9 = vld [vmem:[%s970_s1 + $0x8] sm:$0xff]   ;;  %v829_v11 = vld [vmem:[%s970_s1] sm:$0xff]   ;;  %v842_v13 = vld [vmem:[%s972_s3 + $0x18] sm:$0xff]  }
   0x5   :  { %790 = vmatprep.subr.bf16.mxu1 %v838_v7  ;;  %v840_v10 = vld [vmem:[%s972_s3 + $0x28] sm:$0xff]   ;;  %v841_v12 = vld [vmem:[%s972_s3 + $0x20] sm:$0xff]   ;;  %v832_v15 = vld [vmem:[%s971_s0 + $0x10] sm:$0xff]  }
   0x6   :  { %791 = vmatpush3.bf16.msra.mxu1 %v838_v7  ;;  %v831_v14 = vld [vmem:[%s971_s0 + $0x8] sm:$0xff]   ;;  %v833_v16 = vld [vmem:[%s971_s0 + $0x18] sm:$0xff]   ;;  %v834_v17 = vld [vmem:[%s971_s0 + $0x20] sm:$0xff]  }
   0x7   :  { %761 = vmatpush3.bf16.msra.mxu0 %v823_v1  ;;  %792 = vmatprep.subr.bf16.mxu1 %v839_v8  ;;  %v835_v18 = vld [vmem:[%s971_s0 + $0x28] sm:$0xff]   ;;  %v836_v19 = vld [vmem:[%s971_s0 + $0x30] sm:$0xff]   ;;  %v837_v20 = vld [vmem:[%s971_s0 + $0x38] sm:$0xff]  }
   0x8   :  { %762 = vmatprep.subr.bf16.mxu0 %v824_v2  ;;  %v843_v21 = vld [vmem:[%s972_s3 + $0x10] sm:$0xff]   ;;  %v844_v22 = vld [vmem:[%s972_s3 + $0x8] sm:$0xff]   ;;  %v845_v23 = vld [vmem:[%s972_s3] sm:$0xff]  }
   0x9   :  { %v638_v26 = vld [vmem:[%s973_s2] ss:$0 sm:$0xff] }
   0xa   :  { %793 = vmatpush3.bf16.msra.mxu1 %v839_v8 }
   0xb   :  { %763 = vmatpush3.bf16.msra.mxu0 %v824_v2  ;;  %794 = vmatprep.subr.bf16.mxu1 %v840_v10 }
   0xc   :  { %764 = vmatprep.subr.bf16.mxu0 %v825_v3 }
   0xe   :  { %795 = vmatpush3.bf16.msra.mxu1 %v840_v10 }
   0xf   :  { %765 = vmatpush3.bf16.msra.mxu0 %v825_v3  ;;  %796 = vmatprep.subr.bf16.mxu1 %v841_v12 }
  0x10   :  { %766 = vmatprep.subr.bf16.mxu0 %v826_v5 }
  0x12   :  { %797 = vmatpush3.bf16.msra.mxu1 %v841_v12 }
  0x13   :  { %767 = vmatpush3.bf16.msra.mxu0 %v826_v5  ;;  %798 = vmatprep.subr.bf16.mxu1 %v842_v13 }
  0x14   :  { %768 = vmatprep.subr.bf16.mxu0 %v827_v6 }
  0x16   :  { %799 = vmatpush3.bf16.msra.mxu1 %v842_v13 }
  0x17   :  { %769 = vmatpush3.bf16.msra.mxu0 %v827_v6  ;;  %800 = vmatprep.subr.bf16.mxu1 %v843_v21 }
  0x18   :  { %770 = vmatprep.subr.bf16.mxu0 %v828_v9 }
  0x1a   :  { %801 = vmatpush3.bf16.msra.mxu1 %v843_v21 }
  0x1b   :  { %771 = vmatpush3.bf16.msra.mxu0 %v828_v9  ;;  %802 = vmatprep.subr.bf16.mxu1 %v844_v22 }
  0x1c   :  { %772 = vmatprep.subr.bf16.mxu0 %v829_v11 }
  0x1e   :  { %803 = vmatpush3.bf16.msra.mxu1 %v844_v22 }
  0x1f   :  { %773 = vmatpush3.bf16.msra.mxu0 %v829_v11  ;;  %804 = vmatprep.subr.bf16.mxu1 %v845_v23 }
  0x22   :  { %775 = vmatmul.mubr.bf16.vlgmr.msra.gmra.mxu0 %v831_v14  ;;  %805 = vmatpush3.bf16.msra.mxu1 %v845_v23 }
  0x23   :  { %778 = vmatprep.mubr.bf16.mxu0 %v832_v15 }
  0x2a   :  { %779 = vmatmul.mubr.bf16.gmra.mxu0 %v833_v16 }
  0x2b   :  { %782 = vmatprep.mubr.bf16.mxu0 %v834_v17 }
  0x32   :  { %783 = vmatmul.mubr.bf16.gmra.mxu0 %v835_v18 }
  0x33   :  { %786 = vmatprep.mubr.bf16.mxu0 %v836_v19 }
  0x3a   :  { %787 = vmatmul.mubr.bf16.gmra.mxu0 %v837_v20 }
  0xe2   :  { %v776_v24 = vpop.f32.mrf.mxu0 }
  0xe3   :  { %v339_v30 = vadd.f32 %v776_v24, %v638_v26 }
  0xe4   :  { %v216_v25 = vpop.f32.mrf.mxu0 }
  0xe5   :  { %v337_v28 = vadd.f32 %v638_v26, %v216_v25  ;;  %v355_v37 = vmax.f32 %v339_v30, 0.0 }
  0xe6   :  { %v777_v27 = vpop.f32.mrf.mxu0 }
  0xe7   :  { %v340_v29 = vadd.f32 %v777_v27, %v638_v26  ;;  %v353_v35 = vmax.f32 %v337_v28, 0.0 }
  0xe8   :  { %v219_v31 = vpop.f32.mrf.mxu0 }
  0xe9   :  { %v338_v32 = vadd.f32 %v638_v26, %v219_v31  ;;  %v356_v33 = vmax.f32 %v340_v29, 0.0 }
  0xea   :  { %v780_v34 = vpop.f32.mrf.mxu0 }
  0xeb   :  { %v354_v36 = vmax.f32 %v338_v32, 0.0  ;;  %v370_v40 = vpack.c.bf16 %v356_v33, %v355_v37  ;;  %v343_v44 = vadd.f32 %v780_v34, %v638_v26 }
  0xec   :  { %v232_v38 = vpop.f32.mrf.mxu0 }
  0xed   :  { %v369_v39 = vpack.c.bf16 %v354_v36, %v353_v35  ;;  %v341_v42 = vadd.f32 %v638_v26, %v232_v38  ;;  %v359_v51 = vmax.f32 %v343_v44, 0.0 }
  0xee   :  { %v781_v41 = vpop.f32.mrf.mxu0 }
  0xef   :  { %v344_v43 = vadd.f32 %v781_v41, %v638_v26  ;;  %806 = vmatprep.mubr.bf16.mxu1 %v369_v39  ;;  %v357_v49 = vmax.f32 %v341_v42, 0.0 }
  0xf0   :  { %v235_v45 = vpop.f32.mrf.mxu0  ;;  %807 = vmatmul.mubr.bf16.vlgmr.msra.gmra.mxu1 %v370_v40 }
  0xf1   :  { %v342_v46 = vadd.f32 %v638_v26, %v235_v45  ;;  %v360_v47 = vmax.f32 %v344_v43, 0.0 }
  0xf2   :  { %v784_v48 = vpop.f32.mrf.mxu0 }
  0xf3   :  { %v358_v50 = vmax.f32 %v342_v46, 0.0  ;;  %v372_v54 = vpack.c.bf16 %v360_v47, %v359_v51  ;;  %v347_v58 = vadd.f32 %v784_v48, %v638_v26 }
  0xf4   :  { %v248_v52 = vpop.f32.mrf.mxu0 }
  0xf5   :  { %v371_v53 = vpack.c.bf16 %v358_v50, %v357_v49  ;;  %v345_v56 = vadd.f32 %v638_v26, %v248_v52  ;;  %v363_v1 = vmax.f32 %v347_v58, 0.0 }
  0xf6   :  { %v785_v55 = vpop.f32.mrf.mxu0 }
  0xf7   :  { %v348_v57 = vadd.f32 %v785_v55, %v638_v26  ;;  %810 = vmatprep.mubr.bf16.mxu1 %v371_v53  ;;  %v361_v63 = vmax.f32 %v345_v56, 0.0 }
  0xf8   :  { %v251_v59 = vpop.f32.mrf.mxu0  ;;  %811 = vmatmul.mubr.bf16.gmra.mxu1 %v372_v54 }
  0xf9   :  { %v346_v60 = vadd.f32 %v638_v26, %v251_v59  ;;  %v364_v61 = vmax.f32 %v348_v57, 0.0 }
  0xfa   :  { %v788_v62 = vpop.f32.mrf.mxu0 }
  0xfb   :  { %v362_v0 = vmax.f32 %v346_v60, 0.0  ;;  %v374_v4 = vpack.c.bf16 %v364_v61, %v363_v1  ;;  %v351_v8 = vadd.f32 %v788_v62, %v638_v26 }
  0xfc   :  { %v264_v2 = vpop.f32.mrf.mxu0 }
  0xfd   :  { %v373_v3 = vpack.c.bf16 %v362_v0, %v361_v63  ;;  %v349_v6 = vadd.f32 %v638_v26, %v264_v2  ;;  %v367_v14 = vmax.f32 %v351_v8, 0.0 }
  0xfe   :  { %v789_v5 = vpop.f32.mrf.mxu0 }
  0xff   :  { %v352_v7 = vadd.f32 %v789_v5, %v638_v26  ;;  %814 = vmatprep.mubr.bf16.mxu1 %v373_v3  ;;  %v365_v12 = vmax.f32 %v349_v6, 0.0 }
 0x100   :  { %v267_v9 = vpop.f32.mrf.mxu0  ;;  %815 = vmatmul.mubr.bf16.gmra.mxu1 %v374_v4 }
 0x101   :  { %v350_v10 = vadd.f32 %v638_v26, %v267_v9  ;;  %v368_v11 = vmax.f32 %v352_v7, 0.0 }
 0x103   :  { %v366_v13 = vmax.f32 %v350_v10, 0.0  ;;  %v376_v16 = vpack.c.bf16 %v368_v11, %v367_v14 }
 0x105   :  { %v375_v15 = vpack.c.bf16 %v366_v13, %v365_v12 }
 0x107   :  { %818 = vmatprep.mubr.bf16.mxu1 %v375_v15 }
 0x108   :  { %819 = vmatmul.mubr.bf16.gmra.mxu1 %v376_v16 }
 0x1b0   :  { %v808_v17 = vpop.f32.mrf.mxu1 }
 0x1b2   :  { %v475_v18 = vpop.f32.mrf.mxu1 }
 0x1b4   :  { %v809_v19 = vpop.f32.mrf.mxu1 }
 0x1b5   :  { %v687_v20 = vpack.c.bf16 %v809_v19, %v808_v17 }
 0x1b6   :  { %v478_v21 = vpop.f32.mrf.mxu1 }
 0x1b7   :  { %719 = vst [vmem:[%s974_s4 + $0x8] sm:$0xff] %v687_v20   ;;  %v682_v22 = vpack.c.bf16 %v478_v21, %v475_v18 }
 0x1b8   :  { %v812_v23 = vpop.f32.mrf.mxu1 }
 0x1b9   :  { %683 = vst [vmem:[%s974_s4] sm:$0xff] %v682_v22  }
 0x1ba   :  { %v491_v24 = vpop.f32.mrf.mxu1 }
 0x1bc   :  { %v813_v25 = vpop.f32.mrf.mxu1 }
 0x1bd   :  { %v697_v26 = vpack.c.bf16 %v813_v25, %v812_v23 }
 0x1be   :  { %v494_v27 = vpop.f32.mrf.mxu1 }
 0x1bf   :  { %721 = vst [vmem:[%s974_s4 + $0x18] sm:$0xff] %v697_v26   ;;  %v692_v28 = vpack.c.bf16 %v494_v27, %v491_v24 }
 0x1c0   :  { %v816_v29 = vpop.f32.mrf.mxu1 }
 0x1c1   :  { %720 = vst [vmem:[%s974_s4 + $0x10] sm:$0xff] %v692_v28  }
 0x1c2   :  { %v507_v30 = vpop.f32.mrf.mxu1 }
 0x1c4   :  { %v817_v31 = vpop.f32.mrf.mxu1 }
 0x1c5   :  { %v707_v32 = vpack.c.bf16 %v817_v31, %v816_v29 }
 0x1c6   :  { %v510_v33 = vpop.f32.mrf.mxu1 }
 0x1c7   :  { %723 = vst [vmem:[%s974_s4 + $0x28] sm:$0xff] %v707_v32   ;;  %v702_v34 = vpack.c.bf16 %v510_v33, %v507_v30 }
 0x1c8   :  { %v820_v35 = vpop.f32.mrf.mxu1 }
 0x1c9   :  { %722 = vst [vmem:[%s974_s4 + $0x20] sm:$0xff] %v702_v34  }
 0x1ca   :  { %v523_v36 = vpop.f32.mrf.mxu1 }
 0x1cc   :  { %v821_v37 = vpop.f32.mrf.mxu1 }
 0x1cd   :  { %v717_v38 = vpack.c.bf16 %v821_v37, %v820_v35 }
 0x1ce   :  { %v526_v39 = vpop.f32.mrf.mxu1 }
 0x1cf   :  { %725 = vst [vmem:[%s974_s4 + $0x38] sm:$0xff] %v717_v38   ;;  %v712_v40 = vpack.c.bf16 %v526_v39, %v523_v36 }
 0x1d1   :  { %724 = vst [vmem:[%s974_s4 + $0x30] sm:$0xff] %v712_v40  }

</bundles_post_ra>
